<compile_context>
chip_gen: v5e
topology: v5e:2x2
jax: 0.10.0
libtpu: 0.0.40
codegen_flags: <defaults>
</compile_context>

<pallas_src>
import functools
import math

import jax
import jax.numpy as jnp
from jax.experimental import pallas as pl
from jax.experimental.pallas import tpu as pltpu


def _round_up(n, m):
    return ((n + m - 1) // m) * m


# ---------------------------------------------------------------------------
# Kernel: T GRU steps inside one pallas_call (grid=(T,)).
# ---------------------------------------------------------------------------
def gru_seq_kernel(x_ref, h0_ref, wg_ref, wy_ref, out_ref, hT_ref, h_acc,
                   *, ci, o_valid):
    """One grid step = one GRU cell step + output projection + log-softmax.

    x_ref  : (Bp, Hp)     x_t pre-placed in lanes [0, ci), zeros elsewhere (f32)
    h0_ref : (Bp, Hp)     initial hidden state, zero-padded lanes (f32, resident)
    wg_ref : (Hp, 4*Hp)   block-packed gate weights, bf16, VMEM-resident
    wy_ref : (Hp, Op)     output projection^T, bf16, VMEM-resident
    out_ref: (Bp, Op)     log-softmax output for step t
    hT_ref : (Bp, Hp)     hidden state after the last step
    h_acc  : (Bp, Hp)     f32 VMEM scratch carrying h across grid steps
    """
    t = pl.program_id(0)

    @pl.when(t == 0)
    def _():
        h_acc[...] = h0_ref[...]

    hp = h_acc.shape[1]
    h = h_acc[...]                                      # (Bp, Hp) f32, pad lanes == 0

    # Fused [xc | h] slab with no lane concat: roll h's valid lanes [0, H)
    # into [ci, ci+H) (its zero padding wraps into [0, ci)) and add to the
    # pre-placed x slab.  One cast to bf16 feeds the MXU.
    xh = (x_ref[...] + pltpu.roll(h, shift=ci, axis=1)).astype(jnp.bfloat16)

    # Single gate matmul (K = 128 bf16, one MXU pass), column slabs:
    #   [0,Hp) = Wz.xc + Uz.h   [Hp,2Hp) = Wr.xc + Ur.h
    #   [2Hp,3Hp) = Wh.xc       [3Hp,4Hp) = Uh.h
    g = jnp.dot(xh, wg_ref[...], preferred_element_type=jnp.float32)

    zr = jax.nn.sigmoid(g[:, :2 * hp])                  # z and r in one EUP stream
    z = zr[:, :hp]
    r = zr[:, hp:]
    ht = jnp.tanh(g[:, 2 * hp:3 * hp] + r * g[:, 3 * hp:])

    # Padded lanes: g == 0 -> z == 0.5, ht == 0, h == 0  => h_new stays 0.
    h_new = z * h + (1.0 - z) * ht
    h_acc[...] = h_new
    hT_ref[...] = h_new

    # Output head: masked logits -> log-softmax (f32 elementwise).
    logits = jnp.dot(h_new.astype(jnp.bfloat16), wy_ref[...],
                     preferred_element_type=jnp.float32)
    lane = jax.lax.broadcasted_iota(jnp.int32, logits.shape, 1)
    logits = jnp.where(lane < o_valid, logits, jnp.float32(-1e30))
    m = jnp.max(logits, axis=1, keepdims=True)
    shifted = logits - m
    lse = jnp.log(jnp.sum(jnp.exp(shifted), axis=1, keepdims=True))
    out_ref[...] = shifted - lse


# ---------------------------------------------------------------------------
# Wrappers.
# ---------------------------------------------------------------------------
def gru_sequence(xs, h0, params, *, out_size, hidden_size):
    """Run T GRU steps in one pallas_call.

    xs : (T, B, CI) f32, per-step [category | x] inputs.
    h0 : (B, H) f32 initial hidden state.
    Returns (outs (T, B, out_size), h_T (B, H)).
    """
    T, B, CI = xs.shape
    H = hidden_size
    Kp, N4 = params["Wg"].shape
    Hp = N4 // 4
    Op = params["WyT"].shape[1]
    Bp = _round_up(max(B, 1), 8)
    assert Kp == Hp and CI + H <= Hp, "fused [xc|h] roll layout needs CI+H <= Hp"

    # Padding / layout prep happens once per sequence, not per step.
    xs_p = jnp.pad(xs, ((0, 0), (0, Bp - B), (0, Hp - CI)))   # x in lanes [0, CI)
    h0_p = jnp.pad(h0, ((0, Bp - B), (0, Hp - H)))

    kernel = functools.partial(gru_seq_kernel, ci=CI, o_valid=out_size)

    outs_p, hT_p = pl.pallas_call(
        kernel,
        grid=(T,),
        out_shape=(
            jax.ShapeDtypeStruct((T, Bp, Op), jnp.float32),
            jax.ShapeDtypeStruct((Bp, Hp), jnp.float32),
        ),
        in_specs=[
            pl.BlockSpec((None, Bp, Hp), lambda t: (t, 0, 0)),  # x_t (streamed)
            pl.BlockSpec((Bp, Hp), lambda t: (0, 0)),           # h0 (resident)
            pl.BlockSpec((Hp, 4 * Hp), lambda t: (0, 0)),       # gate W (resident)
            pl.BlockSpec((Hp, Op), lambda t: (0, 0)),           # Wy (resident)
        ],
        out_specs=(
            pl.BlockSpec((None, Bp, Op), lambda t: (t, 0, 0)),  # out_t (streamed)
            pl.BlockSpec((Bp, Hp), lambda t: (0, 0)),           # final h
        ),
        scratch_shapes=[pltpu.VMEM((Bp, Hp), jnp.float32)],     # h carry
        compiler_params=pltpu.CompilerParams(
            dimension_semantics=("arbitrary",)),
    )(xs_p, h0_p, params["Wg"], params["WyT"])

    return outs_p[:, :B, :out_size], hT_p[:B, :H]


def gru_forward(category, x, h, params, *, out_size, hidden_size):
    """One GRU step matching the PyTorch module's forward (p1..p6 = None)."""
    if category.shape[1] == 0:
        xc = x                                   # n_categories == 0: skip concat
    else:
        xc = jnp.concatenate((category, x), axis=1)
    outs, h_new = gru_sequence(xc[None], h, params,
                               out_size=out_size, hidden_size=hidden_size)
    return outs[0], h_new


# ---------------------------------------------------------------------------
# Parameter init (PyTorch-equivalent) + packing for the fused kernel.
# ---------------------------------------------------------------------------
def xavier_uniform(key, out_features, in_features, gain=0.01):
    bound = gain * math.sqrt(6.0 / (in_features + out_features))
    return jax.random.uniform(key, (out_features, in_features),
                              dtype=jnp.float32, minval=-bound, maxval=bound)


def default_linear_init(key, out_features, in_features):
    bound = 1.0 / math.sqrt(in_features)
    return jax.random.uniform(key, (out_features, in_features),
                              dtype=jnp.float32, minval=-bound, maxval=bound)


def init_params(key, input_size, hidden_size, output_size, n_categories=0):
    ci = n_categories + input_size
    H = hidden_size
    keys = jax.random.split(key, 7)
    Wz = xavier_uniform(keys[0], H, ci)
    Wr = xavier_uniform(keys[1], H, ci)
    Wh = xavier_uniform(keys[2], H, ci)
    Uz = xavier_uniform(keys[3], H, H)
    Ur = xavier_uniform(keys[4], H, H)
    Uh = xavier_uniform(keys[5], H, H)
    Wy = default_linear_init(keys[6], output_size, H)

    Hp = _round_up(H, 128)
    Op = _round_up(output_size, 128)
    Kp = Hp
    assert ci + H <= Kp, "fused [xc|h] packing requires ci + hidden <= 128-padded H"

    def slab(x_part, h_part):
        # One (Kp, Hp) column slab: rows [0, ci) multiply xc, rows
        # [ci, ci+H) multiply h, remaining rows / columns are exactly zero.
        blk = jnp.zeros((Kp, Hp), jnp.float32)
        if x_part is not None:
            blk = blk.at[:ci, :H].set(x_part.T)
        if h_part is not None:
            blk = blk.at[ci:ci + H, :H].set(h_part.T)
        return blk

    # Column layout: [ z | r | Wh.xc | Uh.h ], each Hp wide.
    Wg = jnp.concatenate(
        [slab(Wz, Uz), slab(Wr, Ur), slab(Wh, None), slab(None, Uh)], axis=1)
    WyT = jnp.zeros((Hp, Op), jnp.float32).at[:H, :output_size].set(Wy.T)

    packed = {"Wg": Wg.astype(jnp.bfloat16), "WyT": WyT.astype(jnp.bfloat16)}
    reference = {"WzT": Wz.T, "WrT": Wr.T, "WhT": Wh.T,
                 "UzT": Uz.T, "UrT": Ur.T, "UhT": Uh.T, "WyT": Wy.T}
    return packed, reference


# ---------------------------------------------------------------------------
# Pure-JAX references.
# ---------------------------------------------------------------------------
def gru_reference_step(xc, h, p, *, matmul_dtype=jnp.float32):
    """Reference of the PyTorch forward; optionally mimics bf16 matmul inputs."""
    cast = lambda a: a.astype(matmul_dtype)
    dot = lambda a, b: jnp.dot(cast(a), cast(b),
                               preferred_element_type=jnp.float32)
    z = jax.nn.sigmoid(dot(xc, p["WzT"]) + dot(h, p["UzT"]))
    r = jax.nn.sigmoid(dot(xc, p["WrT"]) + dot(h, p["UrT"]))
    ht = jnp.tanh(dot(xc, p["WhT"]) + r * dot(h, p["UhT"]))
    h_new = z * h + (1.0 - z) * ht
    out = jax.nn.log_softmax(dot(h_new, p["WyT"]), axis=1)
    return out, h_new


if __name__ == "__main__":
    # Small shapes consistent with the module (n_categories = 0).
    B, INPUT, HIDDEN, OUTPUT, T = 8, 64, 64, 32, 8

    key = jax.random.PRNGKey(0)
    k_par, k_x, k_h, k_seq = jax.random.split(key, 4)

    params, ref_params = init_params(k_par, INPUT, HIDDEN, OUTPUT,
                                     n_categories=0)
    category = jnp.zeros((B, 0), dtype=jnp.float32)     # n_categories == 0
    x = jax.random.normal(k_x, (B, INPUT), dtype=jnp.float32)
    h = jax.random.normal(k_h, (B, HIDDEN), dtype=jnp.float32)

    # --- single step (module forward semantics) ---
    step = jax.jit(functools.partial(gru_forward, out_size=OUTPUT,
                                     hidden_size=HIDDEN))
    out, h_new = step(category, x, h, params)
    jax.block_until_ready((out, h_new))

    out_f32, h_f32 = gru_reference_step(x, h, ref_params)
    out_bf, h_bf = gru_reference_step(x, h, ref_params,
                                      matmul_dtype=jnp.bfloat16)
    assert out.shape == (B, OUTPUT) and h_new.shape == (B, HIDDEN)
    assert jnp.allclose(h_new, h_bf, atol=1e-4, rtol=1e-4)     # exact-path check
    assert jnp.allclose(out, out_bf, atol=5e-3, rtol=5e-3)
    assert jnp.allclose(h_new, h_f32, atol=2e-3, rtol=2e-3)    # vs f32 reference
    assert jnp.allclose(out, out_f32, atol=6e-2, rtol=6e-2)    # bf16 matmul tol

    # --- fused T-step sequence (one pallas_call, weights VMEM-resident) ---
    xs = jax.random.normal(k_seq, (T, B, INPUT), dtype=jnp.float32)
    seq = jax.jit(functools.partial(gru_sequence, out_size=OUTPUT,
                                    hidden_size=HIDDEN))
    outs, h_T = seq(xs, h, params)
    jax.block_until_ready((outs, h_T))

    h_ref = h
    outs_ref = []
    for t in range(T):
        o_t, h_ref = gru_reference_step(xs[t], h_ref, ref_params,
                                        matmul_dtype=jnp.bfloat16)
        outs_ref.append(o_t)
    outs_ref = jnp.stack(outs_ref)
    assert outs.shape == (T, B, OUTPUT) and h_T.shape == (B, HIDDEN)
    assert jnp.allclose(h_T, h_ref, atol=1e-3, rtol=1e-3)
    assert jnp.allclose(outs, outs_ref, atol=1e-2, rtol=1e-2)

    print("KERNEL_OK")
</pallas_src>

<mosaic_0001>
module attributes {stable_mosaic.version = 11 : i64} {
  func.func @gru_seq_kernel(%arg0: i32, %arg1: memref<1x8x128xf32, #tpu.memory_space<vmem>>, %arg2: memref<8x128xf32, #tpu.memory_space<vmem>>, %arg3: memref<128x512xbf16, #tpu.memory_space<vmem>>, %arg4: memref<128x128xbf16, #tpu.memory_space<vmem>>, %arg5: memref<1x8x128xf32, #tpu.memory_space<vmem>>, %arg6: memref<8x128xf32, #tpu.memory_space<vmem>>, %arg7: memref<8x128xf32, #tpu.memory_space<vmem>>) attributes {dimension_semantics = [#tpu.dimension_semantics<arbitrary>], iteration_bounds = array<i64: 1>, scalar_prefetch = 0 : i64, scratch_operands = 1 : i64, tpu.core_type = #tpu.core_type<tc>, window_params = [{transform_indices = @transform_0, window_bounds = array<i64: 1, 8, 128>}, {pipeline_mode = #tpu.pipeline_mode<synchronous>, transform_indices = @transform_1, window_bounds = array<i64: 8, 128>}, {pipeline_mode = #tpu.pipeline_mode<synchronous>, transform_indices = @transform_2, window_bounds = array<i64: 128, 512>}, {pipeline_mode = #tpu.pipeline_mode<synchronous>, transform_indices = @transform_3, window_bounds = array<i64: 128, 128>}, {transform_indices = @transform_4, window_bounds = array<i64: 1, 8, 128>}, {pipeline_mode = #tpu.pipeline_mode<synchronous>, transform_indices = @transform_5, window_bounds = array<i64: 8, 128>}]} {
    %c0_i32 = arith.constant 0 : i32
    %0 = arith.cmpi eq, %arg0, %c0_i32 : i32
    %1 = arith.extui %0 : i1 to i32
    %c0_i32_0 = arith.constant 0 : i32
    %2 = arith.cmpi ne, %1, %c0_i32_0 : i32
    scf.if %2 {
      %c0_22 = arith.constant 0 : index
      %c0_23 = arith.constant 0 : index
      %52 = vector.load %arg2[%c0_22, %c0_23] : memref<8x128xf32, #tpu.memory_space<vmem>>, vector<8x128xf32>
      %c0_24 = arith.constant 0 : index
      %c0_25 = arith.constant 0 : index
      %53 = vector.load %arg7[%c0_24, %c0_25] : memref<8x128xf32, #tpu.memory_space<vmem>>, vector<8x128xf32>
      tpu.vector_store %arg7[%c0_24, %c0_25], %52 {strides = array<i32>} : memref<8x128xf32, #tpu.memory_space<vmem>>, vector<8x128xf32>,
    } else {
    }
    %c0 = arith.constant 0 : index
    %c0_1 = arith.constant 0 : index
    %3 = vector.load %arg7[%c0, %c0_1] : memref<8x128xf32, #tpu.memory_space<vmem>>, vector<8x128xf32>
    %c0_2 = arith.constant 0 : index
    %c0_3 = arith.constant 0 : index
    %c0_4 = arith.constant 0 : index
    %4 = vector.load %arg1[%c0_2, %c0_3, %c0_4] : memref<1x8x128xf32, #tpu.memory_space<vmem>>, vector<1x8x128xf32>
    %5 = vector.shape_cast %4 : vector<1x8x128xf32> to vector<8x128xf32>
    %c64_i32 = arith.constant 64 : i32
    %6 = tpu.dynamic_rotate %3 by %c64_i32 dim 1 : vector<8x128xf32>, i32 -> vector<8x128xf32>
    %7 = arith.addf %5, %6 : vector<8x128xf32>
    %8 = arith.truncf %7 : vector<8x128xf32> to vector<8x128xbf16>
    %c0_5 = arith.constant 0 : index
    %c0_6 = arith.constant 0 : index
    %9 = vector.load %arg3[%c0_5, %c0_6] : memref<128x512xbf16, #tpu.memory_space<vmem>>, vector<128x512xbf16>
    %cst = arith.constant dense<0.000000e+00> : vector<8x512xf32>
    %10 = tpu.matmul %8, %9, %cst {dimension_numbers = #tpu.dot_dimension_numbers<[1], [0], [0], [1], [0, 0, 1, 1], [], []>} : vector<8x128xbf16>, vector<128x512xbf16>, vector<8x512xf32> -> vector<8x512xf32>
    %11 = vector.extract_strided_slice %10 {offsets = [0, 0], sizes = [8, 256], strides = [1, 1]} : vector<8x512xf32> to vector<8x256xf32>
    %12 = arith.negf %11 : vector<8x256xf32>
    %13 = math.exp %12 : vector<8x256xf32>
    %cst_7 = arith.constant 1.000000e+00 : f32
    %14 = vector.broadcast %cst_7 : f32 to vector<8x256xf32>
    %15 = arith.addf %14, %13 : vector<8x256xf32>
    %16 = arith.divf %14, %15 : vector<8x256xf32>
    %17 = vector.extract_strided_slice %16 {offsets = [0, 0], sizes = [8, 128], strides = [1, 1]} : vector<8x256xf32> to vector<8x128xf32>
    %18 = vector.extract_strided_slice %16 {offsets = [0, 128], sizes = [8, 128], strides = [1, 1]} : vector<8x256xf32> to vector<8x128xf32>
    %19 = vector.extract_strided_slice %10 {offsets = [0, 256], sizes = [8, 128], strides = [1, 1]} : vector<8x512xf32> to vector<8x128xf32>
    %20 = vector.extract_strided_slice %10 {offsets = [0, 384], sizes = [8, 128], strides = [1, 1]} : vector<8x512xf32> to vector<8x128xf32>
    %21 = arith.mulf %18, %20 : vector<8x128xf32>
    %22 = arith.addf %19, %21 : vector<8x128xf32>
    %23 = math.tanh %22 : vector<8x128xf32>
    %24 = arith.mulf %17, %3 : vector<8x128xf32>
    %cst_8 = arith.constant 1.000000e+00 : f32
    %25 = vector.broadcast %cst_8 : f32 to vector<8x128xf32>
    %26 = arith.subf %25, %17 : vector<8x128xf32>
    %27 = arith.mulf %26, %23 : vector<8x128xf32>
    %28 = arith.addf %24, %27 : vector<8x128xf32>
    %c0_9 = arith.constant 0 : index
    %c0_10 = arith.constant 0 : index
    %29 = vector.load %arg7[%c0_9, %c0_10] : memref<8x128xf32, #tpu.memory_space<vmem>>, vector<8x128xf32>
    tpu.vector_store %arg7[%c0_9, %c0_10], %28 {strides = array<i32>} : memref<8x128xf32, #tpu.memory_space<vmem>>, vector<8x128xf32>,
    %c0_11 = arith.constant 0 : index
    %c0_12 = arith.constant 0 : index
    %30 = vector.load %arg6[%c0_11, %c0_12] : memref<8x128xf32, #tpu.memory_space<vmem>>, vector<8x128xf32>
    tpu.vector_store %arg6[%c0_11, %c0_12], %28 {strides = array<i32>} : memref<8x128xf32, #tpu.memory_space<vmem>>, vector<8x128xf32>,
    %31 = arith.truncf %28 : vector<8x128xf32> to vector<8x128xbf16>
    %c0_13 = arith.constant 0 : index
    %c0_14 = arith.constant 0 : index
    %32 = vector.load %arg4[%c0_13, %c0_14] : memref<128x128xbf16, #tpu.memory_space<vmem>>, vector<128x128xbf16>
    %cst_15 = arith.constant dense<0.000000e+00> : vector<8x128xf32>
    %33 = tpu.matmul %31, %32, %cst_15 {dimension_numbers = #tpu.dot_dimension_numbers<[1], [0], [0], [1], [0, 0, 1, 1], [], []>} : vector<8x128xbf16>, vector<128x128xbf16>, vector<8x128xf32> -> vector<8x128xf32>
    %34 = tpu.iota {dimensions = array<i32: 1>} : vector<8x128xi32>
    %c32_i32 = arith.constant 32 : i32
    %35 = vector.broadcast %c32_i32 : i32 to vector<8x128xi32>
    %36 = arith.cmpi slt, %34, %35 : vector<8x128xi32>
    %cst_16 = arith.constant -1.000000e+30 : f32
    %37 = vector.broadcast %cst_16 : f32 to vector<8x128xf32>
    %38 = arith.select %36, %33, %37 : vector<8x128xi1>, vector<8x128xf32>
    %cst_17 = arith.constant dense<0xFF800000> : vector<8xf32>
    %39 = vector.multi_reduction <maximumf>, %38, %cst_17 [1] : vector<8x128xf32> to vector<8xf32>
    %40 = vector.shape_cast %39 : vector<8xf32> to vector<8x1xf32>
    %41 = vector.broadcast %40 : vector<8x1xf32> to vector<8x128xf32>
    %42 = arith.subf %38, %41 : vector<8x128xf32>
    %43 = math.exp %42 : vector<8x128xf32>
    %cst_18 = arith.constant dense<0.000000e+00> : vector<8xf32>
    %44 = vector.multi_reduction <add>, %43, %cst_18 [1] : vector<8x128xf32> to vector<8xf32>
    %45 = vector.shape_cast %44 : vector<8xf32> to vector<8x1xf32>
    %46 = math.log %45 : vector<8x1xf32>
    %47 = vector.broadcast %46 : vector<8x1xf32> to vector<8x128xf32>
    %48 = arith.subf %42, %47 : vector<8x128xf32>
    %c0_19 = arith.constant 0 : index
    %c0_20 = arith.constant 0 : index
    %c0_21 = arith.constant 0 : index
    %49 = vector.load %arg5[%c0_19, %c0_20, %c0_21] : memref<1x8x128xf32, #tpu.memory_space<vmem>>, vector<1x8x128xf32>
    %50 = vector.shape_cast %49 : vector<1x8x128xf32> to vector<8x128xf32>
    %51 = vector.shape_cast %48 : vector<8x128xf32> to vector<1x8x128xf32>
    tpu.vector_store %arg5[%c0_19, %c0_20, %c0_21], %51 {strides = array<i32>} : memref<1x8x128xf32, #tpu.memory_space<vmem>>, vector<1x8x128xf32>,
    return
  }
  func.func @transform_0(%arg0: i32) -> (i32, i32, i32) {
    %c0_i32 = arith.constant 0 : i32
    %c0_i32_0 = arith.constant 0 : i32
    %c0_i32_1 = arith.constant 0 : i32
    return %arg0, %c0_i32, %c0_i32_0 : i32, i32, i32
  }
  func.func @transform_1(%arg0: i32) -> (i32, i32) {
    %c0_i32 = arith.constant 0 : i32
    %c0_i32_0 = arith.constant 0 : i32
    %c0_i32_1 = arith.constant 0 : i32
    return %c0_i32, %c0_i32_0 : i32, i32
  }
  func.func @transform_2(%arg0: i32) -> (i32, i32) {
    %c0_i32 = arith.constant 0 : i32
    %c0_i32_0 = arith.constant 0 : i32
    %c0_i32_1 = arith.constant 0 : i32
    return %c0_i32, %c0_i32_0 : i32, i32
  }
  func.func @transform_3(%arg0: i32) -> (i32, i32) {
    %c0_i32 = arith.constant 0 : i32
    %c0_i32_0 = arith.constant 0 : i32
    %c0_i32_1 = arith.constant 0 : i32
    return %c0_i32, %c0_i32_0 : i32, i32
  }
  func.func @transform_4(%arg0: i32) -> (i32, i32, i32) {
    %c0_i32 = arith.constant 0 : i32
    %c0_i32_0 = arith.constant 0 : i32
    %c0_i32_1 = arith.constant 0 : i32
    return %arg0, %c0_i32, %c0_i32_0 : i32, i32, i32
  }
  func.func @transform_5(%arg0: i32) -> (i32, i32) {
    %c0_i32 = arith.constant 0 : i32
    %c0_i32_0 = arith.constant 0 : i32
    %c0_i32_1 = arith.constant 0 : i32
    return %c0_i32, %c0_i32_0 : i32, i32
  }
}

</mosaic_0001>

<bundles_post_ra>
// kernel: gru_forward.1
= control target key start
LH: loop header
LB: loop body
LE: loop exit
PB: predicated region body
PF: predicated region fallthrough
CT: control target
= control target key end

     0   :  { %11 = vsyncpa [#allocation4], 0  ;;  %s830_s0 = inlined_call_operand.vmem [shape: f32[1,8,128], index: 0, kind: input, shape index: {}]   ;;  %s831_s1 = inlined_call_operand.vmem [shape: f32[8,128], index: 1, kind: input, shape index: {}]   ;;  %s832_s2 = inlined_call_operand.hbm [shape: bf16[128,512], index: 2, kind: input, shape index: {}]   ;;  %s833_s3 = inlined_call_operand.hbm [shape: bf16[128,128], index: 3, kind: input, shape index: {}]   ;;  %s834_s4 = inlined_call_operand.vmem [shape: f32[1,8,128], index: 4, kind: output, shape index: {0}]   ;;  %s835_s5 = inlined_call_operand.hbm [shape: f32[8,128], index: 5, kind: output, shape index: {1}]  }
   0x1   :  { %12 = vsyncpa [#allocation7], 0 }
   0x2   :  { %13 = vsyncpa [#allocation5], 0  ;;  %s22_s20 = sshll.u32 %s832_s2, 4  ;;  %s771_s21 = smov [#allocation3]   ;;  %s23_s20 = int_to_ptr.hbm [resolvable:$true] %s22_s20 }
   0x3   :  { %s24_s22 = sshll.u32 %s771_s21, 4  ;;  %s35_s25 = sshll.u32 %s833_s3, 4  ;;  %s25_s22 = int_to_ptr.vmem [resolvable:$true] %s24_s22  ;;  %s36_s25 = int_to_ptr.hbm [resolvable:$true] %s35_s25 }
   0x4   :  { %s772_s26 = smov 256   ;;  %s773_s27 = smov 16  }
   0x5   :  { %30 = dma.hbm_to_vmem [thread:$0]  %s23_s20, 4096, %s25_s22, [#allocation4], %s772_s26, %s772_s26, %s773_s27  }
   0x6   :  { %s774_s28 = smov [#allocation6]   ;;  %s775_s30 = smov 64  }
   0x7   :  { %s37_s29 = sshll.u32 %s774_s28, 4  ;;  %s776_s6 = smov 4   ;;  %s38_s29 = int_to_ptr.vmem [resolvable:$true] %s37_s29 }
   0x8   :  { %43 = dma.hbm_to_vmem [thread:$0]  %s36_s25, 1024, %s38_s29, [#allocation7], %s775_s30, %s775_s30, %s776_s6  }
   0x9   :  { %765 = dma.done.wait [#allocation4], 4096  }
   0xa   :  { %766 = vsyncadd [#allocation4], 4294963200 }
   0xb   :  { %767 = dma.done.wait [#allocation7], 1024  }
   0xc   :  { %768 = vsyncadd [#allocation7], 4294966272  ;;  %v817_v0 = vld [vmem:[%s831_s1] sm:$0xff]  ;;  %v662_v2 = vld [vmem:[#allocation3 + $0xec] sm:$0xf0]  ;;  %s457_s11 = sshll.u32 %s835_s5, 4  ;;  %s458_s11 = int_to_ptr.hbm [resolvable:$true] %s457_s11 }
   0xd   :  { %v584_v1 = vld [vmem:[#allocation3 + $0xe0] sm:$0xf]  ;;  %60 = vrot.lane.b32.xlu0 %v817_v0, %s775_s30  ;;  %v660_v4 = vld [vmem:[#allocation3 + $0xe4] sm:$0xf]  ;;  %v586_v5 = vld [vmem:[#allocation3 + $0xf0] sm:$0xf0] }
   0xe   :  { %v585_v3 = vor.u32 %v662_v2, %v584_v1  ;;  %v592_v6 = vld [vmem:[#allocation3 + $0xe8] sm:$0xf]  ;;  %v589_v7 = vor.u32 %v660_v4, %v586_v5  ;;  %v663_v8 = vld [vmem:[#allocation3 + $0xf4] sm:$0xf0]  ;;  %v661_v9 = vld [vmem:[#allocation3 + $0xec] sm:$0xf] }
   0xf   :  { %v594_v10 = vld [vmem:[#allocation3 + $0xf8] sm:$0xf0]  ;;  %v593_v11 = vor.u32 %v663_v8, %v592_v6  ;;  %v568_v13 = vld [vmem:[#allocation3 + $0xc0] sm:$0xf]  ;;  %v658_v14 = vld [vmem:[#allocation3 + $0xcc] sm:$0xf0] }
  0x10   :  { %256 = vmatpush.bf16.msra.mxu0 %v585_v3  ;;  %v597_v12 = vor.u32 %v661_v9, %v594_v10  ;;  %v656_v15 = vld [vmem:[#allocation3 + $0xc4] sm:$0xf]  ;;  %269 = vmatpush.bf16.msra.mxu1 %v589_v7  ;;  %v569_v16 = vor.u32 %v658_v14, %v568_v13  ;;  %v570_v17 = vld [vmem:[#allocation3 + $0xd0] sm:$0xf0]  ;;  %v576_v18 = vld [vmem:[#allocation3 + $0xc8] sm:$0xf] }
  0x11   :  { %v659_v19 = vld [vmem:[#allocation3 + $0xd4] sm:$0xf0]  ;;  %282 = vmatpush.bf16.msra.mxu2 %v593_v11  ;;  %v573_v20 = vor.u32 %v656_v15, %v570_v17  ;;  %v657_v22 = vld [vmem:[#allocation3 + $0xcc] sm:$0xf]  ;;  %v578_v23 = vld [vmem:[#allocation3 + $0xd8] sm:$0xf0] }
  0x12   :  { %295 = vmatpush.bf16.msra.mxu3 %v597_v12  ;;  %v577_v21 = vor.u32 %v659_v19, %v576_v18  ;;  %v552_v24 = vld [vmem:[#allocation3 + $0xa0] sm:$0xf]  ;;  %v581_v25 = vor.u32 %v657_v22, %v578_v23  ;;  %v654_v26 = vld [vmem:[#allocation3 + $0xac] sm:$0xf0]  ;;  %v652_v27 = vld [vmem:[#allocation3 + $0xa4] sm:$0xf] }
  0x13   :  { %v554_v28 = vld [vmem:[#allocation3 + $0xb0] sm:$0xf0]  ;;  %v553_v29 = vor.u32 %v654_v26, %v552_v24  ;;  %v560_v30 = vld [vmem:[#allocation3 + $0xa8] sm:$0xf]  ;;  %v655_v31 = vld [vmem:[#allocation3 + $0xb4] sm:$0xf0] }
  0x14   :  { %257 = vmatpush.bf16.msra.mxu0 %v569_v16  ;;  %v653_v32 = vld [vmem:[#allocation3 + $0xac] sm:$0xf]  ;;  %270 = vmatpush.bf16.msra.mxu1 %v573_v20  ;;  %v557_v33 = vor.u32 %v652_v27, %v554_v28  ;;  %v562_v34 = vld [vmem:[#allocation3 + $0xb8] sm:$0xf0]  ;;  %v536_v35 = vld [vmem:[#allocation3 + $0x80] sm:$0xf]  ;;  %v561_v37 = vor.u32 %v655_v31, %v560_v30 }
  0x15   :  { %v650_v36 = vld [vmem:[#allocation3 + $0x8c] sm:$0xf0]  ;;  %283 = vmatpush.bf16.msra.mxu2 %v577_v21  ;;  %v565_v38 = vor.u32 %v653_v32, %v562_v34  ;;  %v648_v39 = vld [vmem:[#allocation3 + $0x84] sm:$0xf]  ;;  %v538_v40 = vld [vmem:[#allocation3 + $0x90] sm:$0xf0] }
  0x16   :  { %296 = vmatpush.bf16.msra.mxu3 %v581_v25  ;;  %v544_v41 = vld [vmem:[#allocation3 + $0x88] sm:$0xf]  ;;  %v651_v42 = vld [vmem:[#allocation3 + $0x94] sm:$0xf0]  ;;  %v649_v43 = vld [vmem:[#allocation3 + $0x8c] sm:$0xf]  ;;  %v537_v45 = vor.u32 %v650_v36, %v536_v35  ;;  %v541_v46 = vor.u32 %v648_v39, %v538_v40 }
  0x17   :  { %v546_v44 = vld [vmem:[#allocation3 + $0x98] sm:$0xf0]  ;;  %v520_v47 = vld [vmem:[#allocation3 + $0x60] sm:$0xf]  ;;  %v646_v48 = vld [vmem:[#allocation3 + $0x6c] sm:$0xf0]  ;;  %v545_v49 = vor.u32 %v651_v42, %v544_v41 }
  0x18   :  { %258 = vmatpush.bf16.msra.mxu0 %v553_v29  ;;  %271 = vmatpush.bf16.msra.mxu1 %v557_v33  ;;  %v549_v50 = vor.u32 %v649_v43, %v546_v44  ;;  %v644_v51 = vld [vmem:[#allocation3 + $0x64] sm:$0xf]  ;;  %v522_v52 = vld [vmem:[#allocation3 + $0x70] sm:$0xf0]  ;;  %v528_v53 = vld [vmem:[#allocation3 + $0x68] sm:$0xf]  ;;  %v521_v57 = vor.u32 %v646_v48, %v520_v47 }
  0x19   :  { %284 = vmatpush.bf16.msra.mxu2 %v561_v37  ;;  %v647_v54 = vld [vmem:[#allocation3 + $0x74] sm:$0xf0]  ;;  %v645_v55 = vld [vmem:[#allocation3 + $0x6c] sm:$0xf]  ;;  %v530_v56 = vld [vmem:[#allocation3 + $0x78] sm:$0xf0]  ;;  %v525_v58 = vor.u32 %v644_v51, %v522_v52 }
  0x1a   :  { %297 = vmatpush.bf16.msra.mxu3 %v565_v38  ;;  %v504_v59 = vld [vmem:[#allocation3 + $0x40] sm:$0xf]  ;;  %v642_v60 = vld [vmem:[#allocation3 + $0x4c] sm:$0xf0]  ;;  %v529_v61 = vor.u32 %v647_v54, %v528_v53  ;;  %v533_v62 = vor.u32 %v645_v55, %v530_v56  ;;  %v640_v63 = vld [vmem:[#allocation3 + $0x44] sm:$0xf] }
  0x1b   :  { %v506_v1 = vld [vmem:[#allocation3 + $0x50] sm:$0xf0]  ;;  %v512_v2 = vld [vmem:[#allocation3 + $0x48] sm:$0xf]  ;;  %v643_v3 = vld [vmem:[#allocation3 + $0x54] sm:$0xf0]  ;;  %v505_v6 = vor.u32 %v642_v60, %v504_v59 }
  0x1c   :  { %259 = vmatpush.bf16.msra.mxu0 %v537_v45  ;;  %272 = vmatpush.bf16.msra.mxu1 %v541_v46  ;;  %v641_v4 = vld [vmem:[#allocation3 + $0x4c] sm:$0xf]  ;;  %v514_v5 = vld [vmem:[#allocation3 + $0x58] sm:$0xf0]  ;;  %v509_v7 = vor.u32 %v640_v63, %v506_v1  ;;  %v488_v8 = vld [vmem:[#allocation3 + $0x20] sm:$0xf]  ;;  %v513_v10 = vor.u32 %v643_v3, %v512_v2 }
  0x1d   :  { %285 = vmatpush.bf16.msra.mxu2 %v545_v49  ;;  %v638_v9 = vld [vmem:[#allocation3 + $0x2c] sm:$0xf0]  ;;  %v517_v11 = vor.u32 %v641_v4, %v514_v5  ;;  %v636_v12 = vld [vmem:[#allocation3 + $0x24] sm:$0xf]  ;;  %v490_v13 = vld [vmem:[#allocation3 + $0x30] sm:$0xf0] }
  0x1e   :  { %298 = vmatpush.bf16.msra.mxu3 %v549_v50  ;;  %v496_v14 = vld [vmem:[#allocation3 + $0x28] sm:$0xf]  ;;  %v639_v15 = vld [vmem:[#allocation3 + $0x34] sm:$0xf0]  ;;  %v637_v16 = vld [vmem:[#allocation3 + $0x2c] sm:$0xf]  ;;  %v489_v18 = vor.u32 %v638_v9, %v488_v8  ;;  %v493_v19 = vor.u32 %v636_v12, %v490_v13 }
  0x1f   :  { %v498_v17 = vld [vmem:[#allocation3 + $0x38] sm:$0xf0]  ;;  %v497_v20 = vor.u32 %v639_v15, %v496_v14  ;;  %v472_v22 = vld [vmem:[#allocation3] sm:$0xf]  ;;  %v634_v23 = vld [vmem:[#allocation3 + $0xc] sm:$0xf0] }
  0x20   :  { %260 = vmatpush.bf16.msra.mxu0 %v521_v57  ;;  %273 = vmatpush.bf16.msra.mxu1 %v525_v58  ;;  %v501_v21 = vor.u32 %v637_v16, %v498_v17  ;;  %v632_v24 = vld [vmem:[#allocation3 + $0x4] sm:$0xf]  ;;  %v473_v25 = vor.u32 %v634_v23, %v472_v22  ;;  %v474_v26 = vld [vmem:[#allocation3 + $0x10] sm:$0xf0]  ;;  %v480_v27 = vld [vmem:[#allocation3 + $0x8] sm:$0xf] }
  0x21   :  { %286 = vmatpush.bf16.msra.mxu2 %v529_v61  ;;  %v635_v28 = vld [vmem:[#allocation3 + $0x14] sm:$0xf0]  ;;  %v477_v29 = vor.u32 %v632_v24, %v474_v26  ;;  %v633_v31 = vld [vmem:[#allocation3 + $0xc] sm:$0xf]  ;;  %v482_v32 = vld [vmem:[#allocation3 + $0x18] sm:$0xf0] }
  0x22   :  { %299 = vmatpush.bf16.msra.mxu3 %v533_v62  ;;  %v481_v30 = vor.u32 %v635_v28, %v480_v27  ;;  %v485_v33 = vor.u32 %v633_v31, %v482_v32  ;;  %v59_v34 = vld [vmem:[%s830_s0] sm:$0xff]  ;;  %v671_v38 = vld [vmem:[#allocation6 + $0x38] sm:$0xff]  ;;  %v670_v39 = vld [vmem:[#allocation6 + $0x30] sm:$0xff]  ;;  %s777_s0 = smov [#allocation8]  }
  0x23   :  { %v669_v40 = vld [vmem:[#allocation6 + $0x28] sm:$0xff]  ;;  %v668_v41 = vld [vmem:[#allocation6 + $0x20] sm:$0xff]  ;;  %v667_v42 = vld [vmem:[#allocation6 + $0x18] sm:$0xff]  ;;  %s455_s8 = sshll.u32 %s777_s0, 4  ;;  %s456_s8 = int_to_ptr.vmem [resolvable:$true] %s455_s8 }
  0x24   :  { %261 = vmatpush.bf16.msra.mxu0 %v505_v6  ;;  %274 = vmatpush.bf16.msra.mxu1 %v509_v7  ;;  %v666_v47 = vld [vmem:[#allocation6 + $0x10] sm:$0xff]  ;;  %v665_v48 = vld [vmem:[#allocation6 + $0x8] sm:$0xff]  ;;  %v664_v53 = vld [vmem:[#allocation6] sm:$0xff] }
  0x25   :  { %287 = vmatpush.bf16.msra.mxu2 %v513_v10 }
  0x26   :  { %300 = vmatpush.bf16.msra.mxu3 %v517_v11 }
  0x28   :  { %262 = vmatpush.bf16.msra.mxu0 %v489_v18  ;;  %275 = vmatpush.bf16.msra.mxu1 %v493_v19 }
  0x29   :  { %288 = vmatpush.bf16.msra.mxu2 %v497_v20 }
  0x2a   :  { %301 = vmatpush.bf16.msra.mxu3 %v501_v21 }
  0x2c   :  { %263 = vmatpush.bf16.msra.mxu0 %v473_v25  ;;  %276 = vmatpush.bf16.msra.mxu1 %v477_v29  ;;  %v433_v25 = vlaneseq }
  0x2d   :  { %289 = vmatpush.bf16.msra.mxu2 %v481_v30 }
  0x2e   :  { %302 = vmatpush.bf16.msra.mxu3 %v485_v33  ;;  %v434_v26 = vand.u32 127, %v433_v25 }
  0x30   :  { %420 = vmatpush.bf16.msrb.mxu0 %v671_v38  ;;  %vm435_vm8 = vcmp.lt.s32.totalorder %v434_v26, 32 }
  0x34   :  { %421 = vmatpush.bf16.msrb.mxu0 %v670_v39 }
  0x38   :  { %422 = vmatpush.bf16.msrb.mxu0 %v669_v40 }
  0x3c   :  { %423 = vmatpush.bf16.msrb.mxu0 %v668_v41 }
  0x40   :  { %424 = vmatpush.bf16.msrb.mxu0 %v667_v42 }
  0x44   :  { %425 = vmatpush.bf16.msrb.mxu0 %v666_v47 }
  0x48   :  { %426 = vmatpush.bf16.msrb.mxu0 %v665_v48 }
  0x4c   :  { %427 = vmatpush.bf16.msrb.mxu0 %v664_v53 }
  0x7f   :  { %v61_v35 = vpop.permute.xlu0 %60 }
  0x80   :  { %v62_v36 = vadd.f32 %v61_v35, %v59_v34 }
  0x82   :  { %v63_v37 = vpack.c.bf16 %v62_v36, %v62_v36 }
  0x84   :  { %264 = vmatmul.bf16.vlgmr.msra.gmra.mxu0 %v63_v37  ;;  %277 = vmatmul.bf16.vlgmr.msra.gmra.mxu1 %v63_v37 }
  0x85   :  { %290 = vmatmul.bf16.vlgmr.msra.gmra.mxu2 %v63_v37  ;;  %303 = vmatmul.bf16.vlgmr.msra.gmra.mxu3 %v63_v37 }
 0x101   :  { %v265_v43 = vpop.f32.mrf.mxu0  ;;  %v278_v44 = vpop.f32.mrf.mxu1 }
 0x102   :  { %v598_v45 = vmul.f32 -1.442695, %v265_v43  ;;  %v599_v46 = vmul.f32 -1.442695, %v278_v44 }
 0x104   :  { %679 = vpow2.f32 %v598_v45 }
 0x105   :  { %681 = vpow2.f32 %v599_v46 }
 0x108   :  { %v291_v49 = vpop.f32.mrf.mxu2  ;;  %v304_v50 = vpop.f32.mrf.mxu3 }
 0x109   :  { %v267_v51 = vpop.f32.mrf.mxu0  ;;  %v280_v52 = vpop.f32.mrf.mxu1 }
 0x10a   :  { %v680_v54 = vpop.eup %679 }
 0x10b   :  { %v682_v55 = vpop.eup %681  ;;  %v314_v56 = vadd.f32 1.0, %v680_v54 }
 0x10c   :  { %v315_v57 = vadd.f32 1.0, %v682_v55 }
 0x10d   :  { %683 = vrcp.f32 %v314_v56  ;;  %v327_v13 = vand.u32 2147483648, %v314_v56  ;;  %vm321_vm5 = vweird.f32 %v314_v56  ;;  %v325_v14 = vand.u32 2147483647, %v314_v56 }
 0x10e   :  { %685 = vrcp.f32 %v315_v57  ;;  %v342_v3 = vand.u32 2147483648, %v315_v57  ;;  %v340_v5 = vand.u32 2147483647, %v315_v57  ;;  %vm336_vm1 = vweird.f32 %v315_v57 }
 0x10f   :  { %v328_v17 = vor.u32 1.1754944e-38, %v327_v13  ;;  %vm326_vm7 = vcmp.eq.f32.partialorder %v325_v14, 8.507059e+37 }
 0x110   :  { %v293_v58 = vpop.f32.mrf.mxu2  ;;  %v306_v59 = vpop.f32.mrf.mxu3  ;;  %v343_v8 = vor.u32 1.1754944e-38, %v342_v3  ;;  %vm341_vm3 = vcmp.eq.f32.partialorder %v340_v5, 8.507059e+37 }
 0x113   :  { %v684_v60 = vpop.eup %683 }
 0x114   :  { %v686_v61 = vpop.eup %685  ;;  %v317_v62 = vmul.f32 %v684_v60, %v314_v56  ;;  %vm322_vm4 = vweird.f32 %v684_v60 }
 0x115   :  { %v332_v63 = vmul.f32 %v686_v61, %v315_v57  ;;  %vm337_vm0 = vweird.f32 %v686_v61  ;;  %vm323_vm6 = vmor %vm321_vm5, %vm322_vm4 }
 0x116   :  { %v318_v1 = vsub.f32 1.0, %v317_v62  ;;  %vm338_vm2 = vmor %vm336_vm1, %vm337_vm0 }
 0x117   :  { %v333_v2 = vsub.f32 1.0, %v332_v63 }
 0x118   :  { %v319_v6 = vmul.f32 %v684_v60, %v318_v1 }
 0x119   :  { %v334_v4 = vmul.f32 %v686_v61, %v333_v2 }
 0x11a   :  { %v320_v11 = vadd.f32 %v684_v60, %v319_v6 }
 0x11b   :  { %v335_v7 = vadd.f32 %v686_v61, %v334_v4 }
 0x11c   :  { %v324_v16 = vsel %vm323_vm6, %v684_v60, %v320_v11 }
 0x11d   :  { %v339_v9 = vsel %vm338_vm2, %v686_v61, %v335_v7  ;;  %v329_v18 = vsel %vm326_vm7, %v328_v17, %v324_v16 }
 0x11e   :  { %v344_v10 = vsel %vm341_vm3, %v343_v8, %v339_v9  ;;  %v350_v19 = vsub.f32 1.0, %v329_v18  ;;  %v349_v21 = vmul.f32 %v329_v18, %v817_v0 }
 0x11f   :  { %v346_v12 = vmul.f32 %v344_v10, %v304_v50 }
 0x121   :  { %v347_v15 = vadd.f32 %v346_v12, %v291_v49 }
 0x123   :  { %687 = vtanh.f32 %v347_v15 }
 0x129   :  { %v688_v20 = vpop.eup %687 }
 0x12a   :  { %v351_v22 = vmul.f32 %v688_v20, %v350_v19 }
 0x12c   :  { %v352_v23 = vadd.f32 %v351_v22, %v349_v21 }
 0x12e   :  { %v355_v24 = vpack.c.bf16 %v352_v23, %v352_v23  ;;  %354 = vst [vmem:[#allocation8] sm:$0xff] %v352_v23 }
 0x12f   :  { %460 = dma.vmem_to_hbm [thread:$0]  %s456_s8, 128, %s458_s11, [#allocation5]  }
 0x130   :  { %428 = vmatmul.bf16.vlgmr.msrb.gmra.mxu0 %v355_v24 }
 0x1ad   :  { %v429_v27 = vpop.f32.mrf.mxu0 }
 0x1ae   :  { %v436_v28 = vsel %vm435_vm8, %v429_v27, -1e+30 }
 0x1af   :  { %437 = vmax.xlane.f32.xlu0 %v436_v28 }
 0x1b5   :  { %v431_v29 = vpop.f32.mrf.mxu0 }
 0x222   :  { %v438_v30 = vpop.xlane.xlu0 %437 }
 0x223   :  { %v439_v31 = vsub.f32 %v436_v28, %v438_v30 }
 0x225   :  { %v440_v32 = vmul.f32 1.442695, %v439_v31 }
 0x227   :  { %689 = vpow2.f32 %v440_v32 }
 0x22d   :  { %v690_v0 = vpop.eup %689 }
 0x22e   :  { %442 = vadd.xlane.f32.xlu1 %v690_v0 }
 0x2a1   :  { %v443_v33 = vpop.xlane.xlu1 %442 }
 0x2a2   :  { %691 = vlog2.f32 %v443_v33 }
 0x2a8   :  { %v692_v34 = vpop.eup %691 }
 0x2a9   :  { %v445_v35 = vmul.f32 0.6931472, %v692_v34 }
 0x2ab   :  { %v446_v36 = vsub.f32 %v439_v31, %v445_v35 }
 0x2ad   :  { %447 = vst [vmem:[%s834_s4] sm:$0xff] %v446_v36 }
 0x2ae   :  { %769 = dma.done.wait [#allocation5], 128  }
 0x2af   :  { %770 = vsyncadd [#allocation5], 4294967168 }
 0x2b0   :  { %467 = vsyncpa [#allocation4], 1 }
 0x2b1   :  { %468 = vsyncpa [#allocation7], 1 }
 0x2b2   :  { %469 = vsyncpa [#allocation5], 1 }

</bundles_post_ra>
